<compile_context>
chip_gen: v5e
topology: v5e:2x2
jax: 0.10.0
libtpu: 0.0.40
codegen_flags: <defaults>
</compile_context>

<pallas_src>
import jax
import jax.numpy as jnp
from jax.experimental import pallas as pl
from jax.experimental.pallas import tpu as pltpu


def _round_up(x, m):
    return (x + m - 1) // m * m


def _sublane_multiple(dtype):
    # Packed-sublane granularity for the second-to-last block dim.
    return {4: 8, 2: 16, 1: 32}.get(jnp.dtype(dtype).itemsize, 8)


def _tpu_gen_params():
    """Generation-gated tiling / VMEM parameters."""
    kind = ""
    try:
        kind = jax.devices()[0].device_kind.lower()
    except Exception:
        pass
    if "v7" in kind:
        # 64 MiB VMEM per TC, 2 TCs per chip.
        return dict(budget_bytes=6 << 20, num_splits=2,
                    vmem_limit_bytes=48 << 20, vmem_phys_bytes=60 << 20)
    if "v6" in kind:
        # 128 MiB VMEM, single TC: big blocks, fewer grid steps.
        return dict(budget_bytes=12 << 20, num_splits=1,
                    vmem_limit_bytes=96 << 20, vmem_phys_bytes=120 << 20)
    if "v5e" in kind or "v5 lite" in kind or "v5lite" in kind:
        # Keep headroom below the 16 MiB scoped default; raise limit explicitly.
        return dict(budget_bytes=3 << 20, num_splits=1,
                    vmem_limit_bytes=64 << 20, vmem_phys_bytes=120 << 20)
    # Unknown TPU: conservative.
    return dict(budget_bytes=4 << 20, num_splits=1,
                vmem_limit_bytes=64 << 20, vmem_phys_bytes=60 << 20)


def _make_byol_kernel(batch, block_rows, steps):
    def kernel(online_ref, target_ref, out_ref, acc_ref):
        # acc_ref: (block_rows, 1) f32 per-row partial cosine sims for this
        # split, resident across the trailing reduction axis.
        s = pl.program_id(0)
        i = pl.program_id(1)

        @pl.when(i == 0)
        def _():
            acc_ref[...] = jnp.zeros_like(acc_ref)

        o = online_ref[...].astype(jnp.float32)            # (TB, D)
        t = target_ref[...].astype(jnp.float32)            # (TB, D)

        so = jnp.sum(o * o, axis=-1, keepdims=True)        # (TB, 1)
        st = jnp.sum(t * t, axis=-1, keepdims=True)        # (TB, 1)
        sot = jnp.sum(o * t, axis=-1, keepdims=True)       # (TB, 1)

        # F.normalize: x / max(||x||, eps), eps=1e-12  ==  x * rsqrt(max(||x||^2, eps^2))
        eps2 = jnp.float32(1e-24)
        inv_o = jax.lax.rsqrt(jnp.maximum(so, eps2))
        inv_t = jax.lax.rsqrt(jnp.maximum(st, eps2))
        sim = sot * inv_o * inv_t                          # (TB, 1) cosine sim

        # Mask rows past the true batch size: covers both the partial last
        # block and fully out-of-range (clamped-DMA) blocks of the last split.
        blk = s * steps + i
        row0 = blk * block_rows
        row_ids = row0 + jax.lax.broadcasted_iota(jnp.int32, (block_rows, 1), 0)
        sim = jnp.where(row_ids < batch, sim, 0.0)

        acc_ref[...] += sim                                # pure VPU add

        # Single cross-sublane reduce + (1,1) store per split.
        @pl.when(i == steps - 1)
        def _():
            out_ref[...] = jnp.sum(acc_ref[...], axis=0, keepdims=True)

    return kernel


def byol_loss(online, target, *, block_rows=None, num_splits=None):
    """-2 * mean_i cos_sim(online_i, target_i), matching the PyTorch BYOLLoss."""
    assert online.shape == target.shape and online.ndim == 2
    B, D = online.shape
    dtype = online.dtype
    itemsize = jnp.dtype(dtype).itemsize
    cfg = _tpu_gen_params()
    sub = _sublane_multiple(dtype)
    row_bytes = D * itemsize

    # Batch tile: multiple of the dtype sublane packing, capped by the
    # generation-specific per-input-block VMEM budget and by the batch itself.
    if block_rows is None:
        tb = max(sub, (cfg["budget_bytes"] // max(1, row_bytes)) // sub * sub)
        block_rows = min(tb, _round_up(B, sub))
    else:
        block_rows = max(sub, _round_up(int(block_rows), sub))
        block_rows = min(block_rows, _round_up(B, sub))

    total_blocks = pl.cdiv(B, block_rows)

    # Split the batch across independent "parallel" grid slots (v7x megacore);
    # single-TC chips default to 1 split (pure overhead otherwise).
    if num_splits is None:
        num_splits = cfg["num_splits"]
    num_splits = max(1, min(int(num_splits), total_blocks))
    steps = pl.cdiv(total_blocks, num_splits)

    # Explicit VMEM limit: 2 inputs x 2 double-buffers x one block, plus the
    # small scratch/output, with headroom — bounded by physical VMEM.
    block_bytes = block_rows * row_bytes
    vmem_needed = 4 * block_bytes + block_rows * 4 * 128 + (1 << 20)
    vmem_limit = int(min(max(cfg["vmem_limit_bytes"], vmem_needed),
                         cfg["vmem_phys_bytes"]))
    # TODO(synk): if a single minimal-row block still exceeds physical VMEM
    # (extremely wide D), add a D-axis reduction grid dim and accumulate
    # so/st/sot in scratch, applying rsqrt only at the last D step.

    max_blk = total_blocks - 1

    def in_index_map(s, i):
        # Clamp so DMAs of fully out-of-range blocks (last split when
        # total_blocks isn't a multiple of num_splits) stay in bounds; the
        # kernel-side row mask zeroes their contribution.
        return (jnp.minimum(s * steps + i, max_blk), 0)

    kernel = _make_byol_kernel(B, block_rows, steps)

    flops = 6 * B * D                                      # 3 muls + 3 add-reduces / elem
    bytes_accessed = 2 * B * D * itemsize + num_splits * 4

    partial = pl.pallas_call(
        kernel,
        out_shape=jax.ShapeDtypeStruct((num_splits, 1), jnp.float32),
        grid_spec=pltpu.PrefetchScalarGridSpec(
            num_scalar_prefetch=0,
            grid=(num_splits, steps),
            in_specs=[
                pl.BlockSpec((block_rows, D), in_index_map),
                pl.BlockSpec((block_rows, D), in_index_map),
            ],
            out_specs=pl.BlockSpec((1, 1), lambda s, i: (s, 0)),
            scratch_shapes=[pltpu.VMEM((block_rows, 1), jnp.float32)],
        ),
        # NOTE(v7x): if a profile shows one idle TensorCore, switch the leading
        # axis to pltpu.CORE_PARALLEL to force sharding num_splits across TCs.
        compiler_params=pltpu.CompilerParams(
            dimension_semantics=("parallel", "arbitrary"),
            vmem_limit_bytes=vmem_limit,
        ),
        cost_estimate=pl.CostEstimate(
            flops=flops, transcendentals=2 * B, bytes_accessed=bytes_accessed),
    )(online, target)

    # Final (tiny) reduction + -2/mean scaling in the wrapper; masked rows
    # contributed exactly 0, so divide by the true batch size B.
    return (-2.0 / B) * jnp.sum(partial)


def byol_loss_ref(online, target):
    # Pure-JAX reference mirroring the PyTorch module (F.normalize eps=1e-12).
    o = online.astype(jnp.float32)
    t = target.astype(jnp.float32)
    o = o / jnp.maximum(jnp.linalg.norm(o, axis=-1, keepdims=True), 1e-12)
    t = t / jnp.maximum(jnp.linalg.norm(t, axis=-1, keepdims=True), 1e-12)
    return -2.0 * jnp.mean(jnp.sum(o * t, axis=-1))


if __name__ == "__main__":
    key = jax.random.PRNGKey(0)
    k1, k2 = jax.random.split(key)
    # B deliberately not a multiple of the tile to exercise the in-kernel mask.
    B, D = 30, 128
    online = jax.random.normal(k1, (B, D), dtype=jnp.float32)
    target = jax.random.normal(k2, (B, D), dtype=jnp.float32)

    ref = byol_loss_ref(online, target)

    # Multi-step grid: block_rows=8 -> 4 blocks, partial last block masked.
    loss = byol_loss(online, target, block_rows=8)
    jax.block_until_ready(loss)
    assert jnp.allclose(loss, ref, atol=1e-5, rtol=1e-4), (loss, ref)

    # Auto-tiled, generation-gated path (single block at this tiny size).
    loss2 = byol_loss(online, target)
    jax.block_until_ready(loss2)
    assert jnp.allclose(loss2, ref, atol=1e-5, rtol=1e-4), (loss2, ref)

    # Explicit 2-split path with an odd block count: the last split's final
    # grid step maps to a fully out-of-range block (clamped DMA + full mask).
    B3 = 20
    online3 = jax.random.normal(k1, (B3, D), dtype=jnp.float32)
    target3 = jax.random.normal(k2, (B3, D), dtype=jnp.float32)
    loss3 = byol_loss(online3, target3, block_rows=8, num_splits=2)
    jax.block_until_ready(loss3)
    ref3 = byol_loss_ref(online3, target3)
    assert jnp.allclose(loss3, ref3, atol=1e-5, rtol=1e-4), (loss3, ref3)

    # bf16 streaming path: exercises dtype-aware sublane rounding (8 -> 16)
    # while accumulating in f32 inside the kernel.
    online_bf = online.astype(jnp.bfloat16)
    target_bf = target.astype(jnp.bfloat16)
    loss_bf = byol_loss(online_bf, target_bf, block_rows=8)
    jax.block_until_ready(loss_bf)
    ref_bf = byol_loss_ref(online_bf, target_bf)
    assert jnp.allclose(loss_bf, ref_bf, atol=1e-4, rtol=1e-3), (loss_bf, ref_bf)

    print("KERNEL_OK")
</pallas_src>

<mosaic_0001>
module attributes {stable_mosaic.version = 11 : i64} {
  func.func @kernel(%arg0: i32, %arg1: i32, %arg2: memref<8x128xf32, #tpu.memory_space<vmem>>, %arg3: memref<8x128xf32, #tpu.memory_space<vmem>>, %arg4: memref<1x1xf32, #tpu.memory_space<vmem>>, %arg5: memref<8x1xf32, #tpu.memory_space<vmem>>) attributes {dimension_semantics = [#tpu.dimension_semantics<parallel>, #tpu.dimension_semantics<arbitrary>], iteration_bounds = array<i64: 1, 4>, scalar_prefetch = 0 : i64, scratch_operands = 1 : i64, tpu.core_type = #tpu.core_type<tc>, window_params = [{transform_indices = @transform_0, window_bounds = array<i64: 8, 128>}, {transform_indices = @transform_1, window_bounds = array<i64: 8, 128>}, {transform_indices = @transform_2, window_bounds = array<i64: 1, 1>}]} {
    %c0_i32 = arith.constant 0 : i32
    %0 = arith.cmpi eq, %arg1, %c0_i32 : i32
    %1 = arith.extui %0 : i1 to i32
    %c0_i32_0 = arith.constant 0 : i32
    %2 = arith.cmpi ne, %1, %c0_i32_0 : i32
    scf.if %2 {
      %cst_14 = arith.constant 0.000000e+00 : f32
      %38 = vector.broadcast %cst_14 : f32 to vector<8x1xf32>
      %c0_15 = arith.constant 0 : index
      %c0_16 = arith.constant 0 : index
      %39 = vector.load %arg5[%c0_15, %c0_16] : memref<8x1xf32, #tpu.memory_space<vmem>>, vector<8x1xf32>
      tpu.vector_store %arg5[%c0_15, %c0_16], %38 {strides = array<i32>} : memref<8x1xf32, #tpu.memory_space<vmem>>, vector<8x1xf32>,
    } else {
    }
    %c0 = arith.constant 0 : index
    %c0_1 = arith.constant 0 : index
    %3 = vector.load %arg2[%c0, %c0_1] : memref<8x128xf32, #tpu.memory_space<vmem>>, vector<8x128xf32>
    %c0_2 = arith.constant 0 : index
    %c0_3 = arith.constant 0 : index
    %4 = vector.load %arg3[%c0_2, %c0_3] : memref<8x128xf32, #tpu.memory_space<vmem>>, vector<8x128xf32>
    %5 = arith.mulf %3, %3 : vector<8x128xf32>
    %cst = arith.constant dense<0.000000e+00> : vector<8xf32>
    %6 = vector.multi_reduction <add>, %5, %cst [1] : vector<8x128xf32> to vector<8xf32>
    %7 = vector.shape_cast %6 : vector<8xf32> to vector<8x1xf32>
    %8 = arith.mulf %4, %4 : vector<8x128xf32>
    %cst_4 = arith.constant dense<0.000000e+00> : vector<8xf32>
    %9 = vector.multi_reduction <add>, %8, %cst_4 [1] : vector<8x128xf32> to vector<8xf32>
    %10 = vector.shape_cast %9 : vector<8xf32> to vector<8x1xf32>
    %11 = arith.mulf %3, %4 : vector<8x128xf32>
    %cst_5 = arith.constant dense<0.000000e+00> : vector<8xf32>
    %12 = vector.multi_reduction <add>, %11, %cst_5 [1] : vector<8x128xf32> to vector<8xf32>
    %13 = vector.shape_cast %12 : vector<8xf32> to vector<8x1xf32>
    %cst_6 = arith.constant 1.000000e-24 : f32
    %14 = vector.broadcast %cst_6 : f32 to vector<8x1xf32>
    %15 = arith.maximumf %7, %14 : vector<8x1xf32>
    %16 = math.rsqrt %15 : vector<8x1xf32>
    %cst_7 = arith.constant 1.000000e-24 : f32
    %17 = vector.broadcast %cst_7 : f32 to vector<8x1xf32>
    %18 = arith.maximumf %10, %17 : vector<8x1xf32>
    %19 = math.rsqrt %18 : vector<8x1xf32>
    %20 = arith.mulf %13, %16 : vector<8x1xf32>
    %21 = arith.mulf %20, %19 : vector<8x1xf32>
    %c4_i32 = arith.constant 4 : i32
    %22 = arith.muli %arg0, %c4_i32 : i32
    %23 = arith.addi %22, %arg1 : i32
    %c8_i32 = arith.constant 8 : i32
    %24 = arith.muli %23, %c8_i32 : i32
    %25 = tpu.iota {dimensions = array<i32: 0>} : vector<8x1xi32>
    %26 = vector.broadcast %24 : i32 to vector<8x1xi32>
    %27 = arith.addi %26, %25 : vector<8x1xi32>
    %c30_i32 = arith.constant 30 : i32
    %28 = vector.broadcast %c30_i32 : i32 to vector<8x1xi32>
    %29 = arith.cmpi slt, %27, %28 : vector<8x1xi32>
    %cst_8 = arith.constant 0.000000e+00 : f32
    %30 = vector.broadcast %cst_8 : f32 to vector<8x1xf32>
    %31 = arith.select %29, %21, %30 : vector<8x1xi1>, vector<8x1xf32>
    %c0_9 = arith.constant 0 : index
    %c0_10 = arith.constant 0 : index
    %32 = vector.load %arg5[%c0_9, %c0_10] : memref<8x1xf32, #tpu.memory_space<vmem>>, vector<8x1xf32>
    %33 = arith.addf %32, %31 : vector<8x1xf32>
    %c0_11 = arith.constant 0 : index
    %c0_12 = arith.constant 0 : index
    %34 = vector.load %arg5[%c0_11, %c0_12] : memref<8x1xf32, #tpu.memory_space<vmem>>, vector<8x1xf32>
    tpu.vector_store %arg5[%c0_11, %c0_12], %33 {strides = array<i32>} : memref<8x1xf32, #tpu.memory_space<vmem>>, vector<8x1xf32>,
    %c3_i32 = arith.constant 3 : i32
    %35 = arith.cmpi eq, %arg1, %c3_i32 : i32
    %36 = arith.extui %35 : i1 to i32
    %c0_i32_13 = arith.constant 0 : i32
    %37 = arith.cmpi ne, %36, %c0_i32_13 : i32
    scf.if %37 {
      %c0_14 = arith.constant 0 : index
      %c0_15 = arith.constant 0 : index
      %38 = vector.load %arg5[%c0_14, %c0_15] : memref<8x1xf32, #tpu.memory_space<vmem>>, vector<8x1xf32>
      %cst_16 = arith.constant dense<0.000000e+00> : vector<1xf32>
      %39 = vector.multi_reduction <add>, %38, %cst_16 [0] : vector<8x1xf32> to vector<1xf32>
      %40 = vector.shape_cast %39 : vector<1xf32> to vector<1x1xf32>
      %c0_17 = arith.constant 0 : index
      %c0_18 = arith.constant 0 : index
      %41 = vector.load %arg4[%c0_17, %c0_18] : memref<1x1xf32, #tpu.memory_space<vmem>>, vector<1x1xf32>
      tpu.vector_store %arg4[%c0_17, %c0_18], %40 {strides = array<i32>} : memref<1x1xf32, #tpu.memory_space<vmem>>, vector<1x1xf32>,
    } else {
    }
    return
  }
  func.func @transform_0(%arg0: i32, %arg1: i32) -> (i32, i32) {
    %c4_i32 = arith.constant 4 : i32
    %0 = arith.muli %arg0, %c4_i32 : i32
    %1 = arith.addi %0, %arg1 : i32
    %c3_i32 = arith.constant 3 : i32
    %2 = arith.minsi %1, %c3_i32 : i32
    %c0_i32 = arith.constant 0 : i32
    %c0_i32_0 = arith.constant 0 : i32
    return %2, %c0_i32 : i32, i32
  }
  func.func @transform_1(%arg0: i32, %arg1: i32) -> (i32, i32) {
    %c4_i32 = arith.constant 4 : i32
    %0 = arith.muli %arg0, %c4_i32 : i32
    %1 = arith.addi %0, %arg1 : i32
    %c3_i32 = arith.constant 3 : i32
    %2 = arith.minsi %1, %c3_i32 : i32
    %c0_i32 = arith.constant 0 : i32
    %c0_i32_0 = arith.constant 0 : i32
    return %2, %c0_i32 : i32, i32
  }
  func.func @transform_2(%arg0: i32, %arg1: i32) -> (i32, i32) {
    %c0_i32 = arith.constant 0 : i32
    %c0_i32_0 = arith.constant 0 : i32
    return %arg0, %c0_i32 : i32, i32
  }
}

</mosaic_0001>

<bundles_post_ra>
// kernel: tpu_custom_call.1
= control target key start
LH: loop header
LB: loop body
LE: loop exit
PB: predicated region body
PF: predicated region fallthrough
CT: control target
= control target key end

     0   :  { %7 = vsyncpa [#allocation4], 0  ;;  %s753_s0 = inlined_call_operand.hbm [shape: f32[30,128], index: 0, kind: input, shape index: {}]   ;;  %s754_s1 = inlined_call_operand.hbm [shape: f32[30,128], index: 1, kind: input, shape index: {}]   ;;  %s755_s2 = inlined_call_operand.hbm [shape: f32[1,1], index: 2, kind: output, shape index: {}]  }
   0x1   :  { %9 = vsyncpa [#allocation4 + $0x1], 0 }
   0x2   :  { %10 = vsyncpa [#allocation7], 0 }
   0x3   :  { %12 = vsyncpa [#allocation7 + $0x1], 0 }
   0x4   :  { %13 = vsyncpa [#allocation5], 0  ;;  %s652_s9 = smov 0   ;;  %s654_s10 = smov 0  }
   0x5   :  { %s656_s11 = smov 0   ;;  %s658_s12 = smov 0  }
   0x6   :  { %s660_s13 = smov 0   ;;  %s662_s14 = smov 0  }
   0x7 LB: > { %s398_s15 = sadd.s32 4294967295, %s633_s14   ;;  %s28_s16 = sadd.s32 1, %s629_s13  ;;  %s633_s14 = sphi %s662_s14, %s19_s14   ;;  %s629_s13 = sphi %s660_s13, %s762_s13   ;;  %s625_s12 = sphi %s658_s12, %s761_s12   ;;  %s621_s11 = sphi %s656_s11, %s760_s11   ;;  %s617_s10 = sphi %s654_s10, %s759_s10   ;;  %s613_s9 = sphi %s652_s9, %s758_s9  }
   0x8   : > { %p29_p0 = scmp.ge.s32.totalorder %s28_s16, 4  ;;  %p37_p1 = scmp.lt.s32.totalorder %s629_s13, 3 }
   0x9   : > { %s46_s17 = sadd.s32 1, %s621_s11  ;;  %p53_p2 = scmp.ne.s32.totalorder %s621_s11, %s617_s10 }
   0xa   : > { %s764_s16 = smov (%p29_p0, %s28_s16), 0  ;;  %p54_p4 = scmp.eq.s32.totalorder %s633_s14, 0 }
   0xb   : > { %s38_s18 = scalar_select %p37_p1, %s629_s13, 3 }
   0xc   : > { %p41_p3 = scmp.lt.s32.totalorder %s764_s16, 3  ;;  %p59_p5 = scmp.ne.s32.totalorder %s617_s10, %s613_s9 }
   0xd   : > { %p60_p6 = scmp.eq.s32.totalorder %s398_s15, 0  ;;  %p695_p7 = por %p54_p4, %p53_p2 }
   0xe   : > { %s42_s19 = scalar_select %p41_p3, %s764_s16, 3 }
   0xf   : > { %p699_p8 = por %p60_p6, %p59_p5  ;;  %p430_p10 = scmp.lt.s32.totalorder %s633_s14, 4 }
  0x10   : > { %s43_s22 = ssub.s32 %s38_s18, %s42_s19  ;;  %s143_s23 = sand.u32 1, %s621_s11  }
  0x11   : > { %p44_p9 = scmp.eq.s32.totalorder %s43_s22, 0  ;;  %s402_s24 = sshll.u32 %s38_s18, 3 }
  0x12   : > { %s401_s26 = sshll.u32 %s143_s23, 3  ;;  %s155_s29 = scalar_lea.hbm %s753_s0, %s402_s24 }
  0x13   : > { %s706_s25 = scalar_select %p44_p9, %s621_s11, %s46_s17  }
  0x14   : > { %s157_s30 = sshll.u32 %s155_s29, 4  ;;  %s147_s3 = scalar_lea.vmem [#allocation3], %s401_s26  ;;  %s158_s30 = int_to_ptr.hbm [resolvable:$true] %s157_s30 }
  0x15   : > { %s159_s4 = sshll.u32 %s147_s3, 4  ;;  %p424_p11 = pnand %p430_p10, %p695_p7  ;;  %s160_s4 = int_to_ptr.vmem [resolvable:$true] %s159_s4 }
  0x16   : > { %p405_p12 = scmp.ge.s32.totalorder %s633_s14, 1  ;;  %p187_p13 = scmp.lt.s32.totalorder %s633_s14, 5 }
  0x17   : > { %s144_s5 = scalar_lea.sflag [#allocation4], %s143_s23  ;;  %s178_s8 = scalar_lea.hbm %s754_s1, %s402_s24 }
  0x18   : > { %426 = dma.hbm_to_vmem [thread:$0]  (!%p424_p11), %s158_s30, 128, %s160_s4, %s144_s5  }
  0x19   : > { %p188_p0 = pnand %p405_p12, %p187_p13  ;;  %s180_s9 = sshll.u32 %s178_s8, 4  ;;  %s181_s9 = int_to_ptr.hbm [resolvable:$true] %s180_s9 }
  0x1a   : > { %s170_s17 = scalar_lea.vmem [#allocation6], %s401_s26  ;;  %s167_s19 = scalar_lea.sflag [#allocation7], %s143_s23 }
  0x1b   : > { %s182_s18 = sshll.u32 %s170_s17, 4  ;;  %191 = sbr.rel (%p188_p0) target bundleno = 224 (0xe0), region = 28  ;;  %s183_s18 = int_to_ptr.vmem [resolvable:$true] %s182_s18 }
  0x1c   : > { %429 = dma.hbm_to_vmem [thread:$0]  (!%p424_p11), %s181_s9, 128, %s183_s18, %s167_s19  }
  0x1d   : > { %s193_s20 = sand.u32 (!%p188_p0), 1, %s617_s10  }
  0x1e   : > { %s406_s22 = sshll.u32 (!%p188_p0), %s193_s20, 3  ;;  %s194_s27 = scalar_lea.sflag (!%p188_p0), [#allocation4], %s193_s20 }
  0x1f   : > { %s197_s28 = scalar_lea.vmem (!%p188_p0), [#allocation3], %s406_s22 }
  0x20   : > { %600 = dma.done.wait (%p699_p8), %s194_s27, 128  }
  0x21   : > { %602 = vsyncadd (%p699_p8), %s194_s27, 4294967168  ;;  %s204_s24 = scalar_lea.sflag [#allocation7], %s193_s20  ;;  %s207_s26 = scalar_lea.vmem [#allocation6], %s406_s22 }
  0x22   : > { %604 = dma.done.wait (%p699_p8), %s204_s24, 128  }
  0x23   : > { %606 = vsyncadd (%p699_p8), %s204_s24, 4294967168  ;;  %p408_p1 = scmp.ne.s32.totalorder %s625_s12, 0 }
  0x25   : > { %240 = sbr.rel (%p408_p1) target bundleno = 44 (0x2c), region = 40 }
  0x2a   : > { %vm241_vm0 = vcmask 7168   ;;  %v635_v0 = vmov 0.0  }
  0x2b   : > { %242 = vst.msk [vmem:[#allocation2] sm:$0xff] %vm241_vm0, %v635_v0 }
  0x2c PF: > { %v243_v1 = vld [vmem:[%s197_s28] sm:$0xff]  ;;  %v244_v2 = vld [vmem:[%s207_s26] sm:$0xff]  ;;  %v281_v14 = vlaneseq  ;;  %s409_s21 = sshll.u32 %s625_s12, 3  ;;  %vm289_vm8 = vcmask 7168   ;;  %p410_p2 = scmp.ne.s32.totalorder %s625_s12, 3 }
  0x2d   : > { %v245_v3 = vmul.f32 %v243_v1, %v243_v1  ;;  %v251_v4 = vmul.f32 %v244_v2, %v243_v1  ;;  %v248_v5 = vmul.f32 %v244_v2, %v244_v2  ;;  %v283_v21 = vstv %s409_s21 }
  0x2e   : > { %v282_v19 = vshrl.u32 %v281_v14, 7 }
  0x2f   : > { %246 = vadd.xlane.f32.xlu0 %v245_v3  ;;  %252 = vadd.xlane.f32.xlu1 %v251_v4 }
  0x30   : > { %v284_v24 = vadd.s32 %v283_v21, %v282_v19 }
  0x32   : > { %vm285_vm7 = vcmp.lt.s32.totalorder %v284_v24, 30  ;;  %v287_v30 = vld [vmem:[#allocation2] sm:$0xff] }
  0x37   : > { %249 = vadd.xlane.f32.xlu0 %v248_v5 }
  0xa2   : > { %v247_v6 = vpop.xlane.xlu0 %246  ;;  %v253_v25 = vpop.xlane.xlu1 %252 }
  0xa3   : > { %v254_v7 = vmax.f32 %v247_v6, 1e-24 }
  0xa5   : > { %483 = vrsqrt.f32 %v254_v7  ;;  %vm261_vm2 = vweird.f32 %v254_v7 }
  0xaa   : > { %v250_v8 = vpop.xlane.xlu0 %249 }
  0xab   : > { %v484_v9 = vpop.eup %483  ;;  %v265_v10 = vmax.f32 %v250_v8, 1e-24 }
  0xac   : > { %v256_v11 = vmul.f32 %v484_v9, %v254_v7  ;;  %vm262_vm1 = vweird.f32 %v484_v9 }
  0xad   : > { %485 = vrsqrt.f32 %v265_v10  ;;  %vm263_vm3 = vmor %vm261_vm2, %vm262_vm1  ;;  %vm272_vm5 = vweird.f32 %v265_v10 }
  0xae   : > { %v257_v12 = vmul.f32 %v484_v9, %v256_v11 }
  0xb0   : > { %v258_v13 = vmul.f32 0.5, %v257_v12 }
  0xb2   : > { %v259_v15 = vsub.f32 1.5, %v258_v13 }
  0xb3   : > { %v486_v16 = vpop.eup %485 }
  0xb4   : > { %v267_v17 = vmul.f32 %v486_v16, %v265_v10  ;;  %v260_v20 = vmul.f32 %v484_v9, %v259_v15  ;;  %vm273_vm4 = vweird.f32 %v486_v16 }
  0xb5   : > { %vm274_vm6 = vmor %vm272_vm5, %vm273_vm4 }
  0xb6   : > { %v268_v18 = vmul.f32 %v486_v16, %v267_v17  ;;  %v264_v26 = vsel %vm263_vm3, %v484_v9, %v260_v20 }
  0xb7   : > { %v276_v28 = vmul.f32 %v264_v26, %v253_v25 }
  0xb8   : > { %v269_v22 = vmul.f32 0.5, %v268_v18 }
  0xba   : > { %v270_v23 = vsub.f32 1.5, %v269_v22 }
  0xbc   : > { %v271_v27 = vmul.f32 %v486_v16, %v270_v23 }
  0xbe   : > { %v275_v29 = vsel %vm274_vm6, %v486_v16, %v271_v27 }
  0xbf   : > { %v277_v31 = vmul.f32 %v276_v28, %v275_v29 }
  0xc0   : > { %294 = sbr.rel (%p410_p2) target bundleno = 218 (0xda), region = 44 }
  0xc1   : > { %v286_v32 = vsel %vm285_vm7, %v277_v31, 0.0 }
  0xc2   : > { %v288_v33 = vadd.f32 %v287_v30, %v286_v32 }
  0xc4   : > { %290 = vst.msk [vmem:[#allocation2] sm:$0xff] %vm289_vm8, %v288_v33 }
  0xc5   : > { %vm303_vm9 = vcmask 0  }
  0xcb   : > { %v295_v34 = vld [vmem:[#allocation2] sm:$0xff] }
  0xcc   : > { %v296_v35 = vsel %vm289_vm8, %v295_v34, 0.0 }
  0xcd   : > { %v297_v36 = vrot.slane %v296_v35, 4 }
  0xcf   : > { %v298_v37 = vadd.f32 %v297_v36, %v296_v35 }
  0xd1   : > { %v299_v38 = vrot.slane %v298_v37, 2 }
  0xd3   : > { %v300_v39 = vadd.f32 %v299_v38, %v298_v37 }
  0xd5   : > { %v301_v40 = vrot.slane %v300_v39, 1 }
  0xd7   : > { %v302_v41 = vadd.f32 %v301_v40, %v300_v39 }
  0xd9   : > { %304 = vst.msk [vmem:[#allocation8] sm:$0x1] %vm303_vm9, %v302_v41 }
  0xda PF: > { %p431_p3 = scmp.eq.s32.totalorder %s398_s15, 3  ;;  %s314_s30 = sshll.u32 %s755_s2, 4  ;;  %s315_s30 = int_to_ptr.hbm [resolvable:$true] %s314_s30 }
  0xdb   : > { %s636_s12 = smov [#allocation8]  }
  0xdc   : > { %s312_s3 = sshll.u32 %s636_s12, 4  ;;  %s313_s3 = int_to_ptr.vmem [resolvable:$true] %s312_s3 }
  0xdd   : > { %420 = dma.vmem_to_hbm [thread:$0]  (%p431_p3), %s313_s3, 16, %s315_s30, [#allocation5]  }
  0xde   : > { %608 = dma.done.wait (%p431_p3), [#allocation5], 16  }
  0xdf   : > { %610 = vsyncadd (%p431_p3), [#allocation5], 4294967280 }
  0xe0 PF: > { %s19_s14 = sadd.s32 1, %s633_s14   ;;  %s758_s9 = smov %s617_s10 }
  0xe1   : > { %p16_p4 = scmp.ge.s32.totalorder %s19_s14, 6   ;;  %s759_s10 = smov %s621_s11 }
  0xe2   : > { %s760_s11 = smov %s706_s25  ;;  %s761_s12 = smov %s629_s13 }
  0xe3   : > { %s762_s13 = smov %s764_s16  ;;  %18 = sbr.rel (!%p16_p4) target bundleno = 7 (0x7), region = 87 }
  0xe8   :  { %328 = vsyncpa [#allocation4], 1 }
  0xe9   :  { %330 = vsyncpa [#allocation4 + $0x1], 1 }
  0xea   :  { %331 = vsyncpa [#allocation7], 1 }
  0xeb   :  { %333 = vsyncpa [#allocation7 + $0x1], 1 }
  0xec   :  { %334 = vsyncpa [#allocation5], 1 }
  0xed   :  { %336 = vsyncpa [#allocation5 + $0x1], 1 }

</bundles_post_ra>
